<compile_context>
chip_gen: v5e
topology: v5e:2x2
jax: 0.10.0
libtpu: 0.0.40
codegen_flags: <defaults>
</compile_context>

<pallas_src>
import math

import jax
import jax.numpy as jnp
from jax.experimental import pallas as pl
from jax.experimental.pallas import tpu as pltpu


def _round_up(a, b):
    return (a + b - 1) // b * b


def block_kernel(x_ref, wc_ref, bc_ref, g_ref, beta_ref, seg_ref, o_ref):
    # x_ref:    (TM, L_IN)     lane-packed row tile (PACK tokens per packed row), f32
    # wc_ref:   (L_IN, L_OUT)  block-diag mean-folded weight kron(I_pack, Wc), bf16
    # bc_ref:   (1, L_OUT)     packed mean-folded bias (b - mean(b)), f32
    # g_ref:    (1, L_OUT)     packed LayerNorm gamma, f32
    # beta_ref: (1, L_OUT)     packed LayerNorm beta, f32
    # seg_ref:  (L_OUT, L_OUT) segment-averaging matrix kron(I_pack, 1/DOUT), bf16
    # o_ref:    (TM, L_OUT)
    #
    # MXU operands in bf16, accumulation in f32.
    x = x_ref[...].astype(jnp.bfloat16)

    # Linear + mean-centering fused: centered = x @ Wc + bc  (per token, per segment).
    centered = jnp.dot(x, wc_ref[...], preferred_element_type=jnp.float32) + bc_ref[...]

    # LayerNorm variance over each DOUT-wide lane segment (biased, eps = 1e-5,
    # matching nn.LayerNorm).  Segment mean of centered^2 on the MXU keeps the
    # epilogue lane-dense with no cross-lane reductions.
    sq = (centered * centered).astype(jnp.bfloat16)
    var = jnp.dot(sq, seg_ref[...], preferred_element_type=jnp.float32)

    # Normalize + affine + SiLU, all in f32 on the VPU/EUP.
    hn = centered * jax.lax.rsqrt(var + 1e-5)
    hn = hn * g_ref[...] + beta_ref[...]
    o_ref[...] = (hn * jax.nn.sigmoid(hn)).astype(o_ref.dtype)


def prepare_block_params(w, b, gamma, beta, *, mxu_dtype=jnp.bfloat16):
    """Build packed / folded parameters ONCE (module init), in the MXU dtype.

    w: (DOUT, D) PyTorch nn.Linear layout. b, gamma, beta: (DOUT,).
    """
    DOUT, D = w.shape

    # Lane-packing factor: pack consecutive token rows into the 128-lane axis so
    # loads/stores are unmasked full-lane ops.
    if D == DOUT and DOUT < 128 and 128 % DOUT == 0:
        pack = 128 // DOUT
    else:
        pack = 1  # correct (but lane-sparse) fallback
    L_in = pack * D
    L_out = pack * DOUT

    w_t = jnp.asarray(w, jnp.float32).T                               # (D, DOUT)
    b_f = jnp.asarray(b, jnp.float32)

    # Fold LayerNorm mean-centering into the projection:
    #   centered_j = sum_d x_d * (W^T[d,j] - mean_j' W^T[d,j']) + (b_j - mean(b))
    wc = w_t - jnp.mean(w_t, axis=1, keepdims=True)                   # (D, DOUT)
    bc = b_f - jnp.mean(b_f)                                          # (DOUT,)

    eye = jnp.eye(pack, dtype=jnp.float32)
    w_block = jnp.kron(eye, wc).astype(mxu_dtype)                     # (L_in, L_out) bf16
    bc_p = jnp.tile(bc, pack).reshape(1, L_out).astype(jnp.float32)
    g_p = jnp.tile(jnp.asarray(gamma, jnp.float32), pack).reshape(1, L_out)
    be_p = jnp.tile(jnp.asarray(beta, jnp.float32), pack).reshape(1, L_out)
    # 1/32 is a power of two -> exact in bf16.
    seg = jnp.kron(eye, jnp.full((DOUT, DOUT), 1.0 / DOUT, jnp.float32)).astype(mxu_dtype)

    return {
        "pack": pack, "D": D, "DOUT": DOUT, "L_in": L_in, "L_out": L_out,
        "w_block": w_block, "bc": bc_p, "gamma": g_p, "beta": be_p, "seg": seg,
    }


def block_forward(x, params, *, tm=2048):
    """x: (B, S, D) (f32 or bf16).  Returns (B, S, DOUT) in x.dtype."""
    B, S, D = x.shape
    assert D == params["D"]
    pack, DOUT = params["pack"], params["DOUT"]
    L_in, L_out = params["L_in"], params["L_out"]
    M = B * S

    # Row tiling over packed rows; pad instead of asserting divisibility so the
    # bandwidth-optimal tm is independent of B*S.
    Mp = _round_up(M, pack) // pack                 # packed rows needed
    tm = _round_up(max(8, tm), 8)
    tm = min(tm, _round_up(Mp, 8))                  # don't overshoot tiny inputs
    Mp_pad = _round_up(Mp, tm)
    M_pad = Mp_pad * pack

    x2 = x.reshape(M, D)
    if M_pad != M:
        x2 = jnp.pad(x2, ((0, M_pad - M), (0, 0)))  # padded rows sliced off below
    xp = x2.reshape(Mp_pad, L_in)                   # free row-major reshape

    grid = (Mp_pad // tm,)

    # VMEM budget: double-buffered x/out tiles dominate; weights are tiny.
    bpe_x = x.dtype.itemsize
    need = (2 * tm * L_in * bpe_x                   # x tiles (dbl-buffered)
            + 2 * tm * L_out * bpe_x                # out tiles (dbl-buffered)
            + 2 * (L_in * L_out + L_out * L_out) * 2  # bf16 weights
            + 2 * 3 * L_out * 4)                    # bias/gamma/beta
    vmem_limit = int(min(64 * 1024 * 1024, max(8 * 1024 * 1024, 4 * need)))

    cost = pl.CostEstimate(
        flops=2 * M_pad * L_in * L_out              # projection matmul
              + 2 * M_pad * L_out * L_out           # variance seg-matmul
              + 8 * M_pad * L_out,                  # elementwise epilogue
        transcendentals=2 * M_pad * L_out,          # rsqrt + sigmoid
        bytes_accessed=(xp.size * bpe_x + Mp_pad * L_out * bpe_x
                        + (L_in * L_out + L_out * L_out) * 2 + 3 * L_out * 4),
    )

    out = pl.pallas_call(
        block_kernel,
        out_shape=jax.ShapeDtypeStruct((Mp_pad, L_out), x.dtype),
        grid_spec=pltpu.PrefetchScalarGridSpec(
            num_scalar_prefetch=0,
            grid=grid,
            in_specs=[
                pl.BlockSpec((tm, L_in), lambda i: (i, 0)),        # x row tile
                pl.BlockSpec((L_in, L_out), lambda i: (0, 0)),     # folded weight (resident)
                pl.BlockSpec((1, L_out), lambda i: (0, 0)),        # folded bias
                pl.BlockSpec((1, L_out), lambda i: (0, 0)),        # ln gamma
                pl.BlockSpec((1, L_out), lambda i: (0, 0)),        # ln beta
                pl.BlockSpec((L_out, L_out), lambda i: (0, 0)),    # segment-mean matrix
            ],
            out_specs=pl.BlockSpec((tm, L_out), lambda i: (i, 0)),
        ),
        compiler_params=pltpu.CompilerParams(
            dimension_semantics=("parallel",),      # megacore / v7x 2-TC sharding
            vmem_limit_bytes=vmem_limit,
        ),
        cost_estimate=cost,
    )(xp, params["w_block"], params["bc"], params["gamma"], params["beta"], params["seg"])

    out = out.reshape(M_pad, DOUT)[:M]
    return out.reshape(B, S, DOUT)


def reference_forward(x, w, b, gamma, beta):
    h = jnp.einsum("bsd,ed->bse", x, w) + b
    mean = jnp.mean(h, axis=-1, keepdims=True)
    var = jnp.mean((h - mean) ** 2, axis=-1, keepdims=True)
    hn = (h - mean) * jax.lax.rsqrt(var + 1e-5)
    hn = hn * gamma + beta
    return hn * jax.nn.sigmoid(hn)


if __name__ == "__main__":
    # Small shapes consistent with the module: tokens of width dim=32 -> dim_out=32
    B, S, DIM, DIM_OUT = 2, 8, 32, 32

    key = jax.random.PRNGKey(0)
    kx, kw, kb = jax.random.split(key, 3)

    x = jax.random.normal(kx, (B, S, DIM), dtype=jnp.float32)

    # Deterministic parameter init (mimic nn.Linear uniform(-1/sqrt(dim), 1/sqrt(dim)))
    bound = 1.0 / math.sqrt(DIM)
    w = jax.random.uniform(kw, (DIM_OUT, DIM), minval=-bound, maxval=bound,
                           dtype=jnp.float32)           # PyTorch layout (out, in)
    b = jax.random.uniform(kb, (DIM_OUT,), minval=-bound, maxval=bound,
                           dtype=jnp.float32)
    gamma = jnp.ones((DIM_OUT,), dtype=jnp.float32)     # nn.LayerNorm defaults
    beta = jnp.zeros((DIM_OUT,), dtype=jnp.float32)

    # Packed / folded params built once (module init), in the MXU dtype (bf16).
    params = prepare_block_params(w, b, gamma, beta)

    out = block_forward(x, params)
    out = jax.block_until_ready(out)

    ref = reference_forward(x, w, b, gamma, beta)
    assert out.shape == (B, S, DIM_OUT)
    # bf16 MXU operands (f32 accumulation): LayerNorm-normalized outputs are O(1),
    # so absolute error is at the ~1e-2 level.
    err = float(jnp.max(jnp.abs(out - ref)))
    assert err < 5e-2, f"mismatch vs reference: max abs err {err}"

    print("KERNEL_OK")
</pallas_src>

<mosaic_0001>
module attributes {stable_mosaic.version = 11 : i64} {
  func.func @block_kernel(%arg0: i32, %arg1: memref<8x128xf32, #tpu.memory_space<vmem>>, %arg2: memref<128x128xbf16, #tpu.memory_space<vmem>>, %arg3: memref<1x128xf32, #tpu.memory_space<vmem>>, %arg4: memref<1x128xf32, #tpu.memory_space<vmem>>, %arg5: memref<1x128xf32, #tpu.memory_space<vmem>>, %arg6: memref<128x128xbf16, #tpu.memory_space<vmem>>, %arg7: memref<8x128xf32, #tpu.memory_space<vmem>>) attributes {dimension_semantics = [#tpu.dimension_semantics<parallel>], iteration_bounds = array<i64: 1>, scalar_prefetch = 0 : i64, scratch_operands = 0 : i64, tpu.core_type = #tpu.core_type<tc>, window_params = [{transform_indices = @transform_0, window_bounds = array<i64: 8, 128>}, {pipeline_mode = #tpu.pipeline_mode<synchronous>, transform_indices = @transform_1, window_bounds = array<i64: 128, 128>}, {pipeline_mode = #tpu.pipeline_mode<synchronous>, transform_indices = @transform_2, window_bounds = array<i64: 1, 128>}, {pipeline_mode = #tpu.pipeline_mode<synchronous>, transform_indices = @transform_3, window_bounds = array<i64: 1, 128>}, {pipeline_mode = #tpu.pipeline_mode<synchronous>, transform_indices = @transform_4, window_bounds = array<i64: 1, 128>}, {pipeline_mode = #tpu.pipeline_mode<synchronous>, transform_indices = @transform_5, window_bounds = array<i64: 128, 128>}, {transform_indices = @transform_6, window_bounds = array<i64: 8, 128>}]} {
    %c0 = arith.constant 0 : index
    %c0_0 = arith.constant 0 : index
    %0 = vector.load %arg1[%c0, %c0_0] : memref<8x128xf32, #tpu.memory_space<vmem>>, vector<8x128xf32>
    %1 = arith.truncf %0 : vector<8x128xf32> to vector<8x128xbf16>
    %c0_1 = arith.constant 0 : index
    %c0_2 = arith.constant 0 : index
    %2 = vector.load %arg2[%c0_1, %c0_2] : memref<128x128xbf16, #tpu.memory_space<vmem>>, vector<128x128xbf16>
    %cst = arith.constant dense<0.000000e+00> : vector<8x128xf32>
    %3 = tpu.matmul %1, %2, %cst {dimension_numbers = #tpu.dot_dimension_numbers<[1], [0], [0], [1], [0, 0, 1, 1], [], []>} : vector<8x128xbf16>, vector<128x128xbf16>, vector<8x128xf32> -> vector<8x128xf32>
    %c0_3 = arith.constant 0 : index
    %c0_4 = arith.constant 0 : index
    %4 = vector.load %arg3[%c0_3, %c0_4] : memref<1x128xf32, #tpu.memory_space<vmem>>, vector<1x128xf32>
    %5 = vector.broadcast %4 : vector<1x128xf32> to vector<8x128xf32>
    %6 = arith.addf %3, %5 : vector<8x128xf32>
    %7 = arith.mulf %6, %6 : vector<8x128xf32>
    %8 = arith.truncf %7 : vector<8x128xf32> to vector<8x128xbf16>
    %c0_5 = arith.constant 0 : index
    %c0_6 = arith.constant 0 : index
    %9 = vector.load %arg6[%c0_5, %c0_6] : memref<128x128xbf16, #tpu.memory_space<vmem>>, vector<128x128xbf16>
    %cst_7 = arith.constant dense<0.000000e+00> : vector<8x128xf32>
    %10 = tpu.matmul %8, %9, %cst_7 {dimension_numbers = #tpu.dot_dimension_numbers<[1], [0], [0], [1], [0, 0, 1, 1], [], []>} : vector<8x128xbf16>, vector<128x128xbf16>, vector<8x128xf32> -> vector<8x128xf32>
    %cst_8 = arith.constant 9.99999974E-6 : f32
    %11 = vector.broadcast %cst_8 : f32 to vector<8x128xf32>
    %12 = arith.addf %10, %11 : vector<8x128xf32>
    %13 = math.rsqrt %12 : vector<8x128xf32>
    %14 = arith.mulf %6, %13 : vector<8x128xf32>
    %c0_9 = arith.constant 0 : index
    %c0_10 = arith.constant 0 : index
    %15 = vector.load %arg4[%c0_9, %c0_10] : memref<1x128xf32, #tpu.memory_space<vmem>>, vector<1x128xf32>
    %16 = vector.broadcast %15 : vector<1x128xf32> to vector<8x128xf32>
    %17 = arith.mulf %14, %16 : vector<8x128xf32>
    %c0_11 = arith.constant 0 : index
    %c0_12 = arith.constant 0 : index
    %18 = vector.load %arg5[%c0_11, %c0_12] : memref<1x128xf32, #tpu.memory_space<vmem>>, vector<1x128xf32>
    %19 = vector.broadcast %18 : vector<1x128xf32> to vector<8x128xf32>
    %20 = arith.addf %17, %19 : vector<8x128xf32>
    %21 = arith.negf %20 : vector<8x128xf32>
    %22 = math.exp %21 : vector<8x128xf32>
    %cst_13 = arith.constant 1.000000e+00 : f32
    %23 = vector.broadcast %cst_13 : f32 to vector<8x128xf32>
    %24 = arith.addf %23, %22 : vector<8x128xf32>
    %25 = arith.divf %23, %24 : vector<8x128xf32>
    %26 = arith.mulf %20, %25 : vector<8x128xf32>
    %c0_14 = arith.constant 0 : index
    %c0_15 = arith.constant 0 : index
    %27 = vector.load %arg7[%c0_14, %c0_15] : memref<8x128xf32, #tpu.memory_space<vmem>>, vector<8x128xf32>
    tpu.vector_store %arg7[%c0_14, %c0_15], %26 {strides = array<i32>} : memref<8x128xf32, #tpu.memory_space<vmem>>, vector<8x128xf32>,
    return
  }
  func.func @transform_0(%arg0: i32) -> (i32, i32) {
    %c0_i32 = arith.constant 0 : i32
    %c0_i32_0 = arith.constant 0 : i32
    return %arg0, %c0_i32 : i32, i32
  }
  func.func @transform_1(%arg0: i32) -> (i32, i32) {
    %c0_i32 = arith.constant 0 : i32
    %c0_i32_0 = arith.constant 0 : i32
    %c0_i32_1 = arith.constant 0 : i32
    return %c0_i32, %c0_i32_0 : i32, i32
  }
  func.func @transform_2(%arg0: i32) -> (i32, i32) {
    %c0_i32 = arith.constant 0 : i32
    %c0_i32_0 = arith.constant 0 : i32
    %c0_i32_1 = arith.constant 0 : i32
    return %c0_i32, %c0_i32_0 : i32, i32
  }
  func.func @transform_3(%arg0: i32) -> (i32, i32) {
    %c0_i32 = arith.constant 0 : i32
    %c0_i32_0 = arith.constant 0 : i32
    %c0_i32_1 = arith.constant 0 : i32
    return %c0_i32, %c0_i32_0 : i32, i32
  }
  func.func @transform_4(%arg0: i32) -> (i32, i32) {
    %c0_i32 = arith.constant 0 : i32
    %c0_i32_0 = arith.constant 0 : i32
    %c0_i32_1 = arith.constant 0 : i32
    return %c0_i32, %c0_i32_0 : i32, i32
  }
  func.func @transform_5(%arg0: i32) -> (i32, i32) {
    %c0_i32 = arith.constant 0 : i32
    %c0_i32_0 = arith.constant 0 : i32
    %c0_i32_1 = arith.constant 0 : i32
    return %c0_i32, %c0_i32_0 : i32, i32
  }
  func.func @transform_6(%arg0: i32) -> (i32, i32) {
    %c0_i32 = arith.constant 0 : i32
    %c0_i32_0 = arith.constant 0 : i32
    return %arg0, %c0_i32 : i32, i32
  }
}

</mosaic_0001>

<bundles_post_ra>
// kernel: tpu_custom_call.1
= control target key start
LH: loop header
LB: loop body
LE: loop exit
PB: predicated region body
PF: predicated region fallthrough
CT: control target
= control target key end

     0   :  { %11 = vsyncpa [#allocation3], 0  ;;  %s551_s0 = inlined_call_operand.hbm [shape: f32[8,128], index: 0, kind: input, shape index: {}]   ;;  %s552_s1 = inlined_call_operand.hbm [shape: bf16[128,128], index: 1, kind: input, shape index: {}]   ;;  %s553_s2 = inlined_call_operand.vmem [shape: f32[1,128], index: 2, kind: input, shape index: {}]   ;;  %s554_s3 = inlined_call_operand.vmem [shape: f32[1,128], index: 3, kind: input, shape index: {}]   ;;  %s555_s4 = inlined_call_operand.vmem [shape: f32[1,128], index: 4, kind: input, shape index: {}]   ;;  %s556_s5 = inlined_call_operand.hbm [shape: bf16[128,128], index: 5, kind: input, shape index: {}]   ;;  %s557_s6 = inlined_call_operand.hbm [shape: f32[8,128], index: 6, kind: output, shape index: {}]  }
   0x1   :  { %12 = vsyncpa [#allocation6], 0  ;;  %s29_s23 = sshll.u32 %s552_s1, 4  ;;  %s30_s23 = int_to_ptr.hbm [resolvable:$true] %s29_s23 }
   0x2   :  { %13 = vsyncpa [#allocation4], 0  ;;  %s489_s24 = smov [#allocation5]   ;;  %s19_s28 = sshll.u32 %s551_s0, 4  ;;  %s20_s28 = int_to_ptr.hbm [resolvable:$true] %s19_s28 }
   0x3   :  { %s31_s25 = sshll.u32 %s489_s24, 4  ;;  %s490_s29 = smov 64   ;;  %s32_s25 = int_to_ptr.vmem [resolvable:$true] %s31_s25 }
   0x4   :  { %s491_s30 = smov 4   ;;  %s492_s7 = smov [#allocation2]  }
   0x5   :  { %37 = dma.hbm_to_vmem [thread:$0]  %s30_s23, 1024, %s32_s25, [#allocation6], %s490_s29, %s490_s29, %s491_s30  }
   0x6   :  { %s21_s8 = sshll.u32 %s492_s7, 4  ;;  %s48_s11 = sshll.u32 %s556_s5, 4  ;;  %s22_s8 = int_to_ptr.vmem [resolvable:$true] %s21_s8  ;;  %s49_s11 = int_to_ptr.hbm [resolvable:$true] %s48_s11 }
   0x7   :  { %24 = dma.hbm_to_vmem [thread:$0]  %s20_s28, 128, %s22_s8, [#allocation3]  }
   0x8   :  { %s493_s1 = smov [#allocation7]  }
   0x9   :  { %s50_s12 = sshll.u32 %s493_s1, 4  ;;  %s51_s12 = int_to_ptr.vmem [resolvable:$true] %s50_s12 }
   0xa   :  { %56 = dma.hbm_to_vmem [thread:$0]  %s49_s11, 1024, %s51_s12, [#allocation6], %s490_s29, %s490_s29, %s491_s30  }
   0xb   :  { %483 = dma.done.wait [#allocation3], 128  }
   0xc   :  { %484 = vsyncadd [#allocation3], 4294967168 }
   0xd   :  { %485 = dma.done.wait [#allocation6], 2048  }
   0xe   :  { %486 = vsyncadd [#allocation6], 4294965248  ;;  %v363_v0 = vld [vmem:[#allocation5 + $0x38] sm:$0xff]  ;;  %v362_v1 = vld [vmem:[#allocation5 + $0x30] sm:$0xff]  ;;  %s280_s18 = sshll.u32 %s557_s6, 4  ;;  %s281_s18 = int_to_ptr.hbm [resolvable:$true] %s280_s18 }
   0xf   :  { %139 = vmatpush.bf16.msra.mxu0 %v363_v0  ;;  %v371_v2 = vld [vmem:[#allocation7 + $0x38] sm:$0xff]  ;;  %v370_v3 = vld [vmem:[#allocation7 + $0x30] sm:$0xff]  ;;  %v361_v4 = vld [vmem:[#allocation5 + $0x28] sm:$0xff] }
  0x10   :  { %218 = vmatpush.bf16.msra.mxu1 %v371_v2  ;;  %v369_v5 = vld [vmem:[#allocation7 + $0x28] sm:$0xff]  ;;  %v360_v6 = vld [vmem:[#allocation5 + $0x20] sm:$0xff]  ;;  %v359_v8 = vld [vmem:[#allocation5 + $0x18] sm:$0xff] }
  0x11   :  { %v368_v7 = vld [vmem:[#allocation7 + $0x20] sm:$0xff]  ;;  %v367_v9 = vld [vmem:[#allocation7 + $0x18] sm:$0xff]  ;;  %v358_v10 = vld [vmem:[#allocation5 + $0x10] sm:$0xff] }
  0x12   :  { %v366_v11 = vld [vmem:[#allocation7 + $0x10] sm:$0xff]  ;;  %v357_v12 = vld [vmem:[#allocation5 + $0x8] sm:$0xff]  ;;  %v356_v13 = vld [vmem:[#allocation5] sm:$0xff] }
  0x13   :  { %140 = vmatpush.bf16.msra.mxu0 %v362_v1  ;;  %v69_v14 = vld [vmem:[#allocation2] sm:$0xff]  ;;  %v365_v16 = vld [vmem:[#allocation7 + $0x8] sm:$0xff]  ;;  %v364_v17 = vld [vmem:[#allocation7] sm:$0xff] }
  0x14   :  { %219 = vmatpush.bf16.msra.mxu1 %v370_v3  ;;  %v70_v15 = vpack.c.bf16 %v69_v14, %v69_v14  ;;  %v378_v18 = vld [vmem:[%s553_s2] ss:$0 sm:$0xff] }
  0x15   :  { %v379_v33 = vld [vmem:[%s554_s3] ss:$0 sm:$0xff]  ;;  %s494_s3 = smov [#allocation8]  }
  0x16   :  { %v380_v36 = vld [vmem:[%s555_s4] ss:$0 sm:$0xff]  ;;  %s278_s4 = sshll.u32 %s494_s3, 4  ;;  %s279_s4 = int_to_ptr.vmem [resolvable:$true] %s278_s4 }
  0x17   :  { %141 = vmatpush.bf16.msra.mxu0 %v361_v4 }
  0x18   :  { %220 = vmatpush.bf16.msra.mxu1 %v369_v5 }
  0x1b   :  { %142 = vmatpush.bf16.msra.mxu0 %v360_v6 }
  0x1c   :  { %221 = vmatpush.bf16.msra.mxu1 %v368_v7 }
  0x1f   :  { %143 = vmatpush.bf16.msra.mxu0 %v359_v8 }
  0x20   :  { %222 = vmatpush.bf16.msra.mxu1 %v367_v9 }
  0x23   :  { %144 = vmatpush.bf16.msra.mxu0 %v358_v10 }
  0x24   :  { %223 = vmatpush.bf16.msra.mxu1 %v366_v11 }
  0x27   :  { %145 = vmatpush.bf16.msra.mxu0 %v357_v12 }
  0x28   :  { %224 = vmatpush.bf16.msra.mxu1 %v365_v16 }
  0x2b   :  { %146 = vmatpush.bf16.msra.mxu0 %v356_v13 }
  0x2c   :  { %225 = vmatpush.bf16.msra.mxu1 %v364_v17 }
  0x2e   :  { %147 = vmatmul.bf16.vlgmr.msra.gmra.mxu0 %v70_v15 }
  0xab   :  { %v148_v19 = vpop.f32.mrf.mxu0 }
  0xac   :  { %v149_v20 = vadd.f32 %v378_v18, %v148_v19 }
  0xae   :  { %v152_v21 = vmul.f32 %v149_v20, %v149_v20 }
  0xb0   :  { %v153_v22 = vpack.c.bf16 %v152_v21, %v152_v21 }
  0xb2   :  { %226 = vmatmul.bf16.vlgmr.msra.gmra.mxu1 %v153_v22 }
  0xb3   :  { %v150_v23 = vpop.f32.mrf.mxu0 }
 0x12f   :  { %v227_v24 = vpop.f32.mrf.mxu1 }
 0x130   :  { %v228_v25 = vadd.f32 1e-05, %v227_v24 }
 0x132   :  { %381 = vrsqrt.f32 %v228_v25  ;;  %vm237_vm1 = vweird.f32 %v228_v25 }
 0x137   :  { %v229_v26 = vpop.f32.mrf.mxu1 }
 0x138   :  { %v382_v27 = vpop.eup %381 }
 0x139   :  { %v232_v28 = vmul.f32 %v382_v27, %v228_v25  ;;  %vm238_vm0 = vweird.f32 %v382_v27 }
 0x13a   :  { %vm239_vm2 = vmor %vm237_vm1, %vm238_vm0 }
 0x13b   :  { %v233_v29 = vmul.f32 %v382_v27, %v232_v28 }
 0x13d   :  { %v234_v30 = vmul.f32 0.5, %v233_v29 }
 0x13f   :  { %v235_v31 = vsub.f32 1.5, %v234_v30 }
 0x141   :  { %v236_v32 = vmul.f32 %v382_v27, %v235_v31 }
 0x143   :  { %v240_v34 = vsel %vm239_vm2, %v382_v27, %v236_v32 }
 0x144   :  { %v241_v35 = vmul.f32 %v240_v34, %v149_v20 }
 0x146   :  { %v246_v37 = vmul.f32 %v379_v33, %v241_v35 }
 0x148   :  { %v251_v38 = vadd.f32 %v380_v36, %v246_v37 }
 0x14a   :  { %v355_v39 = vmul.f32 -1.442695, %v251_v38 }
 0x14c   :  { %383 = vpow2.f32 %v355_v39 }
 0x152   :  { %v384_v40 = vpop.eup %383 }
 0x153   :  { %v255_v41 = vadd.f32 1.0, %v384_v40 }
 0x155   :  { %385 = vrcp.f32 %v255_v41  ;;  %v267_v45 = vand.u32 2147483648, %v255_v41  ;;  %v265_v47 = vand.u32 2147483647, %v255_v41  ;;  %vm261_vm4 = vweird.f32 %v255_v41 }
 0x157   :  { %v268_v49 = vor.u32 1.1754944e-38, %v267_v45  ;;  %vm266_vm6 = vcmp.eq.f32.partialorder %v265_v47, 8.507059e+37 }
 0x15b   :  { %v386_v42 = vpop.eup %385 }
 0x15c   :  { %v257_v43 = vmul.f32 %v386_v42, %v255_v41  ;;  %vm262_vm3 = vweird.f32 %v386_v42 }
 0x15d   :  { %vm263_vm5 = vmor %vm261_vm4, %vm262_vm3 }
 0x15e   :  { %v258_v44 = vsub.f32 1.0, %v257_v43 }
 0x160   :  { %v259_v46 = vmul.f32 %v386_v42, %v258_v44 }
 0x162   :  { %v260_v48 = vadd.f32 %v386_v42, %v259_v46 }
 0x164   :  { %v264_v50 = vsel %vm263_vm5, %v386_v42, %v260_v48 }
 0x165   :  { %v269_v51 = vsel %vm266_vm6, %v268_v49, %v264_v50 }
 0x166   :  { %v271_v52 = vmul.f32 %v269_v51, %v251_v38 }
 0x168   :  { %272 = vst [vmem:[#allocation8] sm:$0xff] %v271_v52 }
 0x169   :  { %283 = dma.vmem_to_hbm [thread:$0]  %s279_s4, 128, %s281_s18, [#allocation4]  }
 0x16a   :  { %487 = dma.done.wait [#allocation4], 128  }
 0x16b   :  { %488 = vsyncadd [#allocation4], 4294967168 }
 0x16c   :  { %288 = vsyncpa [#allocation3], 1 }
 0x16d   :  { %289 = vsyncpa [#allocation6], 1 }
 0x16e   :  { %290 = vsyncpa [#allocation4], 1 }

</bundles_post_ra>
